<compile_context>
chip_gen: v6e
topology: v6e:2x2x1
jax: 0.10.0
libtpu: 0.0.40
codegen_flags: <defaults>
</compile_context>

<pallas_src>
import functools

import jax
import jax.numpy as jnp
from jax.experimental import pallas as pl
from jax.experimental.pallas import tpu as pltpu


def _project_kernel(x_ref, wt_ref, v_ref):
    # x_ref: (m_blk, f) rows of X.view(B*p*s*c, f); wt_ref: (f, f) = W^T; v_ref: (m_blk, f).
    v_ref[...] = jnp.dot(x_ref[...], wt_ref[...], preferred_element_type=jnp.float32)


def _attention_kernel(v_ref, scores_ref, o_ref, *, heads, batch, f):
    # v_ref:      (H, c, B*f)      per-head value slabs, lane index = b*f + fi (resident input)
    # scores_ref: (H, c_blk, c)    pre-reduced attention scores for this step's query rows
    # o_ref:      (c_blk, B, H*f)  final-layout output rows for this step
    s = scores_ref[...]
    s = s - jnp.max(s, axis=-1, keepdims=True)
    e = jnp.exp(s)
    # Softmax denominator via the (otherwise idle) EUP slot.
    w = e * pl.reciprocal(jnp.sum(e, axis=-1, keepdims=True), approx=True)   # (H, c_blk, c)

    for h in range(heads):                      # small static head loop: one MXU op per head
        oh = jnp.dot(w[h], v_ref[h], preferred_element_type=jnp.float32)     # (c_blk, B*f)
        # Re-interleave lanes (b*f+fi) -> (b, h*f+fi).  These are cheap masked stores into the
        # VMEM output block; the HBM writeback of o_ref remains a single lane-dense
        # (c_blk, B, H*f) slab per grid step.
        for b in range(batch):
            o_ref[:, b, h * f:(h + 1) * f] = oh[:, b * f:(b + 1) * f].astype(o_ref.dtype)


def input_attention_layer(X, database_feature_connections, W, *, p, s, c, f):
    """X: (B, p, s, c, f); database_feature_connections: (p, s, c, f, c, f) dense; W: (f, f)."""
    B = X.shape[0]
    H = p * s

    # ---- wrapper glue (X-independent reduction / pure layout; see perf notes above) ----
    # Pre-reduce connections over (f_from, f_to) -> per-head (c, c) scores.
    scores = database_feature_connections.sum(axis=(3, 5)).reshape(H, c, c)

    # ---- kernel 1: v = X.view(B*H*c, f) @ W^T as one matmul over >= 2 parallel row blocks ----
    M = B * H * c
    x2d = X.reshape(M, f)
    wt = W.T
    m_split = 2 if (M % 16 == 0 and M >= 16) else 1    # keep each row block a multiple of 8
    m_blk = M // m_split
    v2d = pl.pallas_call(
        _project_kernel,
        out_shape=jax.ShapeDtypeStruct((M, f), jnp.float32),
        grid=(m_split,),
        in_specs=[
            pl.BlockSpec((m_blk, f), lambda i: (i, 0)),
            pl.BlockSpec((f, f), lambda i: (0, 0)),
        ],
        out_specs=pl.BlockSpec((m_blk, f), lambda i: (i, 0)),
        compiler_params=pltpu.CompilerParams(dimension_semantics=("parallel",)),
    )(x2d, wt)

    # Per-head value slabs with lanes = (batch, feature): v_heads[h, cj, b*f + fi].
    v_heads = v2d.reshape(B, p, s, c, f).transpose(1, 2, 3, 0, 4).reshape(H, c, B * f)

    # ---- kernel 2: softmax + attention over >= 2 parallel blocks of query rows ----
    c_split = 2 if (c % 2 == 0 and c >= 2) else 1
    c_blk = c // c_split
    scores_blocked = scores.reshape(H, c_split, c_blk, c).transpose(1, 0, 2, 3)

    kernel = functools.partial(_attention_kernel, heads=H, batch=B, f=f)
    out = pl.pallas_call(
        kernel,
        out_shape=jax.ShapeDtypeStruct((c, B, H * f), jnp.float32),
        grid=(c_split,),
        in_specs=[
            pl.BlockSpec((H, c, B * f), lambda g: (0, 0, 0)),          # resident across steps
            pl.BlockSpec((None, H, c_blk, c), lambda g: (g, 0, 0, 0)),
        ],
        out_specs=pl.BlockSpec((c_blk, B, H * f), lambda g: (g, 0, 0)),
        compiler_params=pltpu.CompilerParams(dimension_semantics=("parallel",)),
    )(v_heads, scores_blocked)

    # Already the module's output layout: (c, B, p*s*f).
    return out


def _reference(X, kq, W, p, s, c, f):
    B = X.shape[0]
    v = (X.reshape(B, p * s * c, f) @ W.T).reshape(B, p, s, c, f)
    outs = []
    for pi in range(p):
        for si in range(s):
            v_head = v[:, pi, si]                          # (B, c, f)
            kq_head = kq[pi, si]                           # (c, f, c, f)
            sc = kq_head.sum(axis=1).sum(axis=2)           # (c, c)
            w = jax.nn.softmax(sc, axis=-1)
            outs.append(jnp.einsum("ij,bjf->bif", w, v_head))
    out = jnp.concatenate(outs, axis=2)                    # (B, c, p*s*f)
    return jnp.transpose(out, (1, 0, 2))                   # (c, B, p*s*f)


if __name__ == "__main__":
    B, p, s, c, f = 2, 2, 3, 8, 16

    key = jax.random.PRNGKey(0)
    kx, kq_key, kw = jax.random.split(key, 3)

    X = jax.random.normal(kx, (B, p, s, c, f), dtype=jnp.float32)
    database_feature_connections = jax.random.normal(
        kq_key, (p, s, c, f, c, f), dtype=jnp.float32
    )
    # nn.Linear(f, f, bias=False) weight, uniform init in [-1/sqrt(f), 1/sqrt(f)].
    bound = 1.0 / (f ** 0.5)
    W = jax.random.uniform(kw, (f, f), dtype=jnp.float32, minval=-bound, maxval=bound)

    out = input_attention_layer(X, database_feature_connections, W, p=p, s=s, c=c, f=f)
    out = jax.block_until_ready(out)

    ref = _reference(X, database_feature_connections, W, p, s, c, f)
    assert out.shape == (c, B, p * s * f), out.shape
    # Slightly looser tolerance than before: the softmax denominator uses the EUP
    # approximate reciprocal (pl.reciprocal(..., approx=True)).
    assert jnp.allclose(out, ref, rtol=2e-2, atol=2e-2), "mismatch vs reference"

    print("KERNEL_OK")
</pallas_src>

<mosaic_0001>
module attributes {stable_mosaic.version = 11 : i64} {
  func.func @_project_kernel(%arg0: i32, %arg1: memref<48x16xf32, #tpu.memory_space<vmem>>, %arg2: memref<16x16xf32, #tpu.memory_space<vmem>>, %arg3: memref<48x16xf32, #tpu.memory_space<vmem>>) attributes {dimension_semantics = [#tpu.dimension_semantics<parallel>], iteration_bounds = array<i64: 2>, scalar_prefetch = 0 : i64, scratch_operands = 0 : i64, tpu.core_type = #tpu.core_type<tc>, window_params = [{transform_indices = @transform_0, window_bounds = array<i64: 48, 16>}, {pipeline_mode = #tpu.pipeline_mode<synchronous>, transform_indices = @transform_1, window_bounds = array<i64: 16, 16>}, {transform_indices = @transform_2, window_bounds = array<i64: 48, 16>}]} {
    %c0 = arith.constant 0 : index
    %c0_0 = arith.constant 0 : index
    %0 = vector.load %arg1[%c0, %c0_0] : memref<48x16xf32, #tpu.memory_space<vmem>>, vector<48x16xf32>
    %c0_1 = arith.constant 0 : index
    %c0_2 = arith.constant 0 : index
    %1 = vector.load %arg2[%c0_1, %c0_2] : memref<16x16xf32, #tpu.memory_space<vmem>>, vector<16x16xf32>
    %cst = arith.constant dense<0.000000e+00> : vector<48x16xf32>
    %2 = tpu.matmul %0, %1, %cst {dimension_numbers = #tpu.dot_dimension_numbers<[1], [0], [0], [1], [0, 0, 1, 1], [], []>} : vector<48x16xf32>, vector<16x16xf32>, vector<48x16xf32> -> vector<48x16xf32>
    %c0_3 = arith.constant 0 : index
    %c0_4 = arith.constant 0 : index
    %3 = vector.load %arg3[%c0_3, %c0_4] : memref<48x16xf32, #tpu.memory_space<vmem>>, vector<48x16xf32>
    tpu.vector_store %arg3[%c0_3, %c0_4], %2 {strides = array<i32>} : memref<48x16xf32, #tpu.memory_space<vmem>>, vector<48x16xf32>,
    return
  }
  func.func @transform_0(%arg0: i32) -> (i32, i32) {
    %c0_i32 = arith.constant 0 : i32
    %c0_i32_0 = arith.constant 0 : i32
    return %arg0, %c0_i32 : i32, i32
  }
  func.func @transform_1(%arg0: i32) -> (i32, i32) {
    %c0_i32 = arith.constant 0 : i32
    %c0_i32_0 = arith.constant 0 : i32
    %c0_i32_1 = arith.constant 0 : i32
    return %c0_i32, %c0_i32_0 : i32, i32
  }
  func.func @transform_2(%arg0: i32) -> (i32, i32) {
    %c0_i32 = arith.constant 0 : i32
    %c0_i32_0 = arith.constant 0 : i32
    return %arg0, %c0_i32 : i32, i32
  }
}

</mosaic_0001>

<bundles_post_ra>
// kernel: tpu_custom_call.1
= control target key start
LH: loop header
LB: loop body
LE: loop exit
PB: predicated region body
PF: predicated region fallthrough
CT: control target
= control target key end

     0   :  { %s402_s9 = smov 0   ;;  %s437_s0 = inlined_call_operand.vmem [shape: f32[96,16], index: 0, kind: input, shape index: {}]   ;;  %s438_s1 = inlined_call_operand.vmem [shape: f32[16,16], index: 1, kind: input, shape index: {}]   ;;  %s439_s2 = inlined_call_operand.vmem [shape: f32[96,16], index: 2, kind: output, shape index: {}]  }
   0x1 LB: > { %s331_s10 = sadd.s32 4294967295, %s385_s9   ;;  %p335_p0 = scmp.ge.s32.totalorder %s385_s9, 1  ;;  %s385_s9 = sphi %s402_s9, %s12_s9  }
   0x2   : > { %p113_p1 = scmp.lt.s32.totalorder %s385_s9, 3 }
   0x4   : > { %p114_p2 = pnand %p335_p0, %p113_p1 }
   0x5   : > { %s135_s15 = smul.u32 (!%p114_p2), 6, %s331_s10 }
   0x6   : > { %117 = sbr.rel (%p114_p2) target bundleno = 217 (0xd9), region = 28 }
   0x7   : > { %p136_p3 = scmp.lt.s32.totalorder (!%p114_p2), %s135_s15, 11 }
   0xb   : > { %v154_v0 = vld [vmem:[%s438_s1 + $0x8] sm:$0xff]  ;;  %v153_v1 = vld [vmem:[%s438_s1] sm:$0xff]  ;;  %s441_s15 = smov (!%p136_p3, %s135_s15), 11  ;;  %vm155_vm0 = vcmask 130048  }
   0xc   : > { %367 = vmatprep.subr.mxu1 %v154_v0  ;;  %354 = vmatprep.subr.mxu0 %v154_v0  ;;  %s336_s16 = sshll.u32 %s441_s15, 3 }
   0xd   : > { %369 = vmatpush3.msra.mxu1 %v154_v0  ;;  %355 = vmatpush3.msra.mxu0 %v154_v0  ;;  %s139_s19 = scalar_lea.vmem %s437_s0, %s336_s16  ;;  %s145_s22 = scalar_lea.vmem %s439_s2, %s336_s16 }
   0xe   : > { %368 = vmatprep.subr.mxu1 %v153_v1  ;;  %356 = vmatprep.subr.mxu0 %v153_v1  ;;  %v149_v2 = vld [vmem:[%s139_s19 + $0x10] sm:$0xff]  ;;  %v150_v3 = vld [vmem:[%s139_s19 + $0x18] sm:$0xff]  ;;  %v147_v4 = vld [vmem:[%s139_s19] sm:$0xff] }
   0xf   : > { %370 = vmatpush3.msra.mxu1 %v153_v1  ;;  %357 = vmatpush3.msra.mxu0 %v153_v1  ;;  %v148_v5 = vld [vmem:[%s139_s19 + $0x8] sm:$0xff]  ;;  %v151_v6 = vld [vmem:[%s139_s19 + $0x20] sm:$0xff] }
  0x10   : > { %361 = vmatprep.mubr.msk.f32.mxu1 %vm155_vm0, %v149_v2  ;;  %358 = vmatprep.mubr.msk.f32.mxu0 %vm155_vm0, %v147_v4  ;;  %v152_v7 = vld [vmem:[%s139_s19 + $0x28] sm:$0xff] }
  0x11   : > { %362 = vmatmul.mubr.msk.f32.vlgmr.msra.gmra.mxu1 %vm155_vm0, %v150_v3  ;;  %359 = vmatmul.mubr.msk.f32.vlgmr.msra.gmra.mxu0 %vm155_vm0, %v148_v5 }
  0x12   : > { %364 = vmatprep.mubr.msk.f32.mxu1 %vm155_vm0, %v151_v6 }
  0x15   : > { %365 = vmatmul.mubr.msk.f32.gmra.mxu1 %vm155_vm0, %v152_v7 }
  0xd1   : > { %v363_v8 = vpop.f32.mrf.mxu1  ;;  %v360_v9 = vpop.f32.mrf.mxu0 }
  0xd2   : > { %272 = vst.msk [vmem:[%s145_s22 + $0x18] sm:$0xff] %vm155_vm0, %v363_v8  ;;  %270 = vst.msk [vmem:[%s145_s22 + $0x8] sm:$0xff] %vm155_vm0, %v360_v9 }
  0xd3   : > { %v250_v10 = vpop.f32.mrf.mxu1  ;;  %v240_v11 = vpop.f32.mrf.mxu0 }
  0xd4   : > { %271 = vst.msk [vmem:[%s145_s22 + $0x10] sm:$0xff] %vm155_vm0, %v250_v10  ;;  %269 = vst.msk [vmem:[%s145_s22] sm:$0xff] %vm155_vm0, %v240_v11 }
  0xd5   : > { %v366_v12 = vpop.f32.mrf.mxu1 }
  0xd6   : > { %274 = vst.msk [vmem:[%s145_s22 + $0x28] sm:$0xff] %vm155_vm0, %v366_v12 }
  0xd7   : > { %v260_v13 = vpop.f32.mrf.mxu1 }
  0xd8   : > { %273 = vst.msk [vmem:[%s145_s22 + $0x20] sm:$0xff] %vm155_vm0, %v260_v13 }
  0xd9 PF: > { %s12_s9 = sadd.s32 1, %s385_s9  }
  0xda   : > { %p9_p4 = scmp.ge.s32.totalorder %s12_s9, 4  }
  0xdc   :  { %11 = sbr.rel (!%p9_p4) target bundleno = 1 (0x1), region = 58 }

</bundles_post_ra>
